<compile_context>
chip_gen: v6e
topology: v6e:2x2x1
jax: 0.10.0
libtpu: 0.0.40
codegen_flags: <defaults>
</compile_context>

<pallas_src>
import numpy as np
import jax
import jax.numpy as jnp
from jax.experimental import pallas as pl
from jax.experimental.pallas import tpu as pltpu


# -----------------------------------------------------------------------------
# Host-side precompute (pure numpy float64 — no global x64 flag needed):
# ZOH state-space matrices, impulse response H, and its time reversal.
# -----------------------------------------------------------------------------
def _expm(a):
    """Matrix exponential via scaling-and-squaring + Taylor series (float64)."""
    a = np.asarray(a, dtype=np.float64)
    n = a.shape[0]
    nrm = np.linalg.norm(a, ord=np.inf)
    s = 0 if nrm == 0 else max(0, int(np.ceil(np.log2(nrm))) + 1)
    a_s = a / (2.0 ** s)
    e = np.eye(n)
    term = np.eye(n)
    for k in range(1, 30):
        term = term @ a_s / k
        e = e + term
    for _ in range(s):
        e = e @ e
    return e


def state_space_matrices(memory_size, theta):
    """Discretized (zoh, dt=1.0) LMU state-space matrices A, B (float32)."""
    Q = np.arange(memory_size, dtype=np.float64).reshape(-1, 1)
    R = (2.0 * Q + 1.0) / theta
    i, j = np.meshgrid(Q.ravel(), Q.ravel(), indexing="ij")
    A = R * np.where(i < j, -1.0, (-1.0) ** (i - j + 1.0))
    B = R * (-1.0) ** Q
    # cont2discrete(..., dt=1.0, method="zoh")  ==  expm([[A, B], [0, 0]])
    m = memory_size
    em = np.zeros((m + 1, m + 1), dtype=np.float64)
    em[:m, :m] = A
    em[:m, m:] = B
    ems = _expm(em)
    return ems[:m, :m].astype(np.float32), ems[:m, m:].astype(np.float32)


def impulse_response(Ad, Bd, seq_len):
    """H[:, t] = A^t @ B, shape [memory_size, seq_len] (as in LMUFFT.impulse)."""
    m = Ad.shape[0]
    cols = []
    A_i = np.eye(m, dtype=np.float32)
    for _ in range(seq_len):
        cols.append(A_i @ Bd)                 # [m, 1]
        A_i = Ad @ A_i
    return np.concatenate(cols, axis=-1)      # [m, seq_len]


def reversed_impulse(H):
    """H_rev[s, k] = H[k, S-1-s];  then  m[:, S-1, :] = u @ H_rev."""
    return np.ascontiguousarray(H[:, ::-1].T).astype(np.float32)   # [S, M]


# -----------------------------------------------------------------------------
# Pallas kernel: whole Model forward for one batch block per grid step.
# -----------------------------------------------------------------------------
def lmu_fft_kernel(x_ref, wu_ref, bu_ref, hrev_ref, whm_ref, whx_ref,
                   bh_ref, wc_ref, bc_ref, out_ref):
    i_sz, _, s_len = x_ref.shape              # [I, bb, S] — I static & tiny
    whx = whx_ref[...]                        # [I, Hd]   (VPU path, f32)

    # u[b, s] = relu(sum_i x[b, s, i] * W_u[i] + b_u): batch on sublanes, time
    # on lanes, SMEM scalar broadcasts — pure VPU, no padded I tiles, no XLU
    # reduce.  Simultaneously accumulate the x-part of W_h as a VPU outer
    # product (K = I <= 4 would waste an MXU pass).
    u_acc = None
    hx = None
    for i in range(i_sz):                     # static unroll over input_size
        xi = x_ref[i]                         # [bb, S]
        term_u = xi * wu_ref[i]               # SMEM scalar * vreg
        u_acc = term_u if u_acc is None else u_acc + term_u
        xi_last = xi[:, s_len - 1:s_len]      # [bb, 1] last real timestep
        term_h = xi_last * whx[i:i + 1, :]    # [bb, Hd] broadcast outer product
        hx = term_h if hx is None else hx + term_h
    u = jnp.maximum(u_acc + bu_ref[0], 0.0)   # [bb, S]

    # Last-timestep memory: mathematically identical to the rfft/irfft causal
    # convolution evaluated at t = S-1 — a single MXU matmul.
    m_last = jnp.dot(u.astype(hrev_ref.dtype), hrev_ref[...],
                     preferred_element_type=jnp.float32)             # [bb, M]

    # h_n = relu(concat(m_last, x_last) @ W_h + b_h); W_h split host-side so
    # no in-kernel concat — memory part on the MXU, input part already in hx.
    h_n = jnp.maximum(
        jnp.dot(m_last.astype(whm_ref.dtype), whm_ref[...],
                preferred_element_type=jnp.float32)
        + hx + bh_ref[...], 0.0)                                      # [bb, Hd]

    # nn.Dropout(p=0.5) is identity at inference time.
    # TODO(synk): training-mode dropout would use pltpu.prng_random_bits.
    # Classifier: output padded to a 128-lane multiple -> unmasked dense store.
    out_ref[...] = (jnp.dot(h_n.astype(wc_ref.dtype), wc_ref[...],
                            preferred_element_type=jnp.float32)
                    + bc_ref[...])                                    # [bb, O_pad]


# -----------------------------------------------------------------------------
# Wrapper
# -----------------------------------------------------------------------------
def _pick_batch_block(batch):
    """Batch rows per grid step: prefer the largest block that still gives the
    grid >= 2 steps (so v7x's two TensorCores are both used) while filling the
    MXU's 256 (v6e/v7x) / 128 (v5e) row dimension."""
    for c in (256, 128, 64, 32, 16, 8):
        if batch % c == 0 and batch // c >= 2:
            return c
    return batch      # small / odd batches: one full block, grid=(1,)


def prepare_kernel_weights(params, H, *, weight_dtype=jnp.float32, lane_pad=128):
    """One-time weight layout prep (outside the per-step path):
       time-reversed impulse response, SMEM scalar shapes for W_u/b_u, and a
       lane-padded classifier.  weight_dtype=jnp.bfloat16 halves MXU-operand
       bytes/VMEM for production sizes (keep f32 for the tight self-check)."""
    I = params["wu"].shape[0]
    O = params["wc"].shape[1]
    o_pad = max(lane_pad, ((O + lane_pad - 1) // lane_pad) * lane_pad)
    return dict(
        hrev=jnp.asarray(reversed_impulse(H), dtype=weight_dtype),   # [S, M]
        wu=params["wu"].reshape(I).astype(jnp.float32),              # SMEM
        bu=params["bu"].reshape(1).astype(jnp.float32),              # SMEM
        whm=params["whm"].astype(weight_dtype),                      # [M, Hd]
        whx=params["whx"].astype(jnp.float32),                       # [I, Hd] VPU
        bh=params["bh"].astype(jnp.float32),                         # [1, Hd]
        wc=jnp.pad(params["wc"].astype(weight_dtype),
                   ((0, 0), (0, o_pad - O))),                        # [Hd, O_pad]
        bc=jnp.pad(params["bc"].astype(jnp.float32),
                   ((0, 0), (0, o_pad - O))),                        # [1, O_pad]
        out_features=O,
    )


def model_forward(x, kw):
    B, S, I = x.shape
    M = kw["hrev"].shape[1]
    Hd = kw["whm"].shape[1]
    o_pad = kw["wc"].shape[1]
    O = kw["out_features"]
    assert kw["hrev"].shape[0] == S

    # [B, S, I] -> [I, B, S].  For psMNIST (I == 1) this is a pure reshape —
    # no extra HBM pass over x.  For I > 1 keep x in this layout upstream.
    if I == 1:
        x_ibs = x.reshape(1, B, S)
    else:
        x_ibs = jnp.transpose(x, (2, 0, 1))   # TODO(synk): produce upstream

    bb = _pick_batch_block(B)
    grid = (B // bb,)

    out = pl.pallas_call(
        lmu_fft_kernel,
        out_shape=jax.ShapeDtypeStruct((B, o_pad), jnp.float32),
        grid=grid,
        in_specs=[
            pl.BlockSpec((I, bb, S), lambda b: (0, b, 0)),            # x slabs
            pl.BlockSpec(memory_space=pltpu.MemorySpace.SMEM),        # W_u
            pl.BlockSpec(memory_space=pltpu.MemorySpace.SMEM),        # b_u
            pl.BlockSpec((S, M), lambda b: (0, 0)),                   # H_rev
            pl.BlockSpec((M, Hd), lambda b: (0, 0)),                  # W_h (mem)
            pl.BlockSpec((I, Hd), lambda b: (0, 0)),                  # W_h (x)
            pl.BlockSpec((1, Hd), lambda b: (0, 0)),                  # b_h
            pl.BlockSpec((Hd, o_pad), lambda b: (0, 0)),              # W_c (padded)
            pl.BlockSpec((1, o_pad), lambda b: (0, 0)),               # b_c (padded)
        ],
        out_specs=pl.BlockSpec((bb, o_pad), lambda b: (b, 0)),
        compiler_params=pltpu.CompilerParams(
            dimension_semantics=("parallel",)),                       # dual-TC v7x
    )(x_ibs, kw["wu"], kw["bu"], kw["hrev"], kw["whm"], kw["whx"],
      kw["bh"], kw["wc"], kw["bc"])
    return out[:, :O]


# -----------------------------------------------------------------------------
# Pure-JAX reference (FFT path, matches the PyTorch module) — for self-check.
# -----------------------------------------------------------------------------
def reference_forward(x, params, H):
    S = x.shape[1]
    u = jax.nn.relu(jnp.einsum("bsi,io->bso", x, params["wu"]) + params["bu"])
    fft_in = jnp.transpose(u, (0, 2, 1))                      # [B, 1, S]
    fft_u = jnp.fft.rfft(fft_in, n=2 * S, axis=-1)
    fft_H = jnp.fft.rfft(H, n=2 * S, axis=-1)                 # [M, S+1]
    mm = jnp.fft.irfft(fft_u * fft_H[None], n=2 * S, axis=-1)[:, :, :S]
    mm = jnp.transpose(mm, (0, 2, 1))                         # [B, S, M]
    h = jax.nn.relu(jnp.einsum("bsm,mh->bsh", mm, params["whm"])
                    + jnp.einsum("bsi,ih->bsh", x, params["whx"])
                    + params["bh"])
    h_n = h[:, -1, :]
    return h_n @ params["wc"] + params["bc"]


def init_params(key, input_size, hidden_size, memory_size, output_size):
    ks = jax.random.split(key, 7)

    def uinit(k, shape, fan_in):
        b = 1.0 / np.sqrt(fan_in)
        return jax.random.uniform(k, shape, dtype=jnp.float32, minval=-b, maxval=b)

    return dict(
        wu=uinit(ks[0], (input_size, 1), input_size),
        bu=uinit(ks[1], (1, 1), input_size),
        whm=uinit(ks[2], (memory_size, hidden_size), memory_size + input_size),
        whx=uinit(ks[3], (input_size, hidden_size), memory_size + input_size),
        bh=uinit(ks[4], (1, hidden_size), memory_size + input_size),
        wc=uinit(ks[5], (hidden_size, output_size), hidden_size),
        bc=uinit(ks[6], (1, output_size), hidden_size),
    )


if __name__ == "__main__":
    # psMNIST-style config at toy sizes: one pixel per step (input_size = 1).
    input_size, hidden_size, memory_size, seq_len, output_size = 1, 32, 16, 8, 10
    theta = float(seq_len)
    batch = 2

    Ad, Bd = state_space_matrices(memory_size, theta)
    H = impulse_response(Ad, Bd, seq_len)                 # [M, S]

    key = jax.random.PRNGKey(0)
    pkey, xkey = jax.random.split(key)
    params = init_params(pkey, input_size, hidden_size, memory_size, output_size)
    x = jax.random.normal(xkey, (batch, seq_len, input_size), dtype=jnp.float32)

    # f32 weights for the tight check; use weight_dtype=jnp.bfloat16 for prod.
    kweights = prepare_kernel_weights(params, H)

    out = model_forward(x, kweights)
    out = jax.block_until_ready(out)
    assert out.shape == (batch, output_size)

    ref = reference_forward(x, params, jnp.asarray(H))
    np.testing.assert_allclose(np.asarray(out), np.asarray(ref), rtol=1e-3, atol=1e-3)

    print("KERNEL_OK")
</pallas_src>

<mosaic_0001>
module attributes {stable_mosaic.version = 11 : i64} {
  func.func @lmu_fft_kernel(%arg0: i32, %arg1: memref<1x2x8xf32, #tpu.memory_space<vmem>>, %arg2: memref<1xf32, #tpu.memory_space<smem>>, %arg3: memref<1xf32, #tpu.memory_space<smem>>, %arg4: memref<8x16xf32, #tpu.memory_space<vmem>>, %arg5: memref<16x32xf32, #tpu.memory_space<vmem>>, %arg6: memref<1x32xf32, #tpu.memory_space<vmem>>, %arg7: memref<1x32xf32, #tpu.memory_space<vmem>>, %arg8: memref<32x128xf32, #tpu.memory_space<vmem>>, %arg9: memref<1x128xf32, #tpu.memory_space<vmem>>, %arg10: memref<2x128xf32, #tpu.memory_space<vmem>>) attributes {dimension_semantics = [#tpu.dimension_semantics<parallel>], iteration_bounds = array<i64: 1>, scalar_prefetch = 0 : i64, scratch_operands = 0 : i64, tpu.core_type = #tpu.core_type<tc>, window_params = [{transform_indices = @transform_0, window_bounds = array<i64: 1, 2, 8>}, {transform_indices = @transform_1, window_bounds = array<i64: 1>}, {transform_indices = @transform_2, window_bounds = array<i64: 1>}, {pipeline_mode = #tpu.pipeline_mode<synchronous>, transform_indices = @transform_3, window_bounds = array<i64: 8, 16>}, {pipeline_mode = #tpu.pipeline_mode<synchronous>, transform_indices = @transform_4, window_bounds = array<i64: 16, 32>}, {pipeline_mode = #tpu.pipeline_mode<synchronous>, transform_indices = @transform_5, window_bounds = array<i64: 1, 32>}, {pipeline_mode = #tpu.pipeline_mode<synchronous>, transform_indices = @transform_6, window_bounds = array<i64: 1, 32>}, {pipeline_mode = #tpu.pipeline_mode<synchronous>, transform_indices = @transform_7, window_bounds = array<i64: 32, 128>}, {pipeline_mode = #tpu.pipeline_mode<synchronous>, transform_indices = @transform_8, window_bounds = array<i64: 1, 128>}, {transform_indices = @transform_9, window_bounds = array<i64: 2, 128>}]} {
    %c0 = arith.constant 0 : index
    %c0_0 = arith.constant 0 : index
    %0 = vector.load %arg6[%c0, %c0_0] : memref<1x32xf32, #tpu.memory_space<vmem>>, vector<1x32xf32>
    %c0_1 = arith.constant 0 : index
    %c0_2 = arith.constant 0 : index
    %c0_3 = arith.constant 0 : index
    %1 = vector.load %arg1[%c0_1, %c0_2, %c0_3] : memref<1x2x8xf32, #tpu.memory_space<vmem>>, vector<1x2x8xf32>
    %2 = vector.shape_cast %1 : vector<1x2x8xf32> to vector<2x8xf32>
    %c0_4 = arith.constant 0 : index
    %3 = memref.load %arg2[%c0_4] : memref<1xf32, #tpu.memory_space<smem>>
    %4 = vector.broadcast %3 : f32 to vector<2x8xf32>
    %5 = arith.mulf %2, %4 : vector<2x8xf32>
    %6 = vector.extract_strided_slice %2 {offsets = [0, 7], sizes = [2, 1], strides = [1, 1]} : vector<2x8xf32> to vector<2x1xf32>
    %7 = vector.broadcast %6 : vector<2x1xf32> to vector<2x32xf32>
    %8 = vector.broadcast %0 : vector<1x32xf32> to vector<2x32xf32>
    %9 = arith.mulf %7, %8 : vector<2x32xf32>
    %c0_5 = arith.constant 0 : index
    %10 = memref.load %arg3[%c0_5] : memref<1xf32, #tpu.memory_space<smem>>
    %11 = vector.broadcast %10 : f32 to vector<2x8xf32>
    %12 = arith.addf %5, %11 : vector<2x8xf32>
    %cst = arith.constant 0.000000e+00 : f32
    %13 = vector.broadcast %cst : f32 to vector<2x8xf32>
    %14 = arith.maximumf %12, %13 : vector<2x8xf32>
    %c0_6 = arith.constant 0 : index
    %c0_7 = arith.constant 0 : index
    %15 = vector.load %arg4[%c0_6, %c0_7] : memref<8x16xf32, #tpu.memory_space<vmem>>, vector<8x16xf32>
    %cst_8 = arith.constant dense<0.000000e+00> : vector<2x16xf32>
    %16 = tpu.matmul %14, %15, %cst_8 {dimension_numbers = #tpu.dot_dimension_numbers<[1], [0], [0], [1], [0, 0, 1, 1], [], []>} : vector<2x8xf32>, vector<8x16xf32>, vector<2x16xf32> -> vector<2x16xf32>
    %c0_9 = arith.constant 0 : index
    %c0_10 = arith.constant 0 : index
    %17 = vector.load %arg5[%c0_9, %c0_10] : memref<16x32xf32, #tpu.memory_space<vmem>>, vector<16x32xf32>
    %cst_11 = arith.constant dense<0.000000e+00> : vector<2x32xf32>
    %18 = tpu.matmul %16, %17, %cst_11 {dimension_numbers = #tpu.dot_dimension_numbers<[1], [0], [0], [1], [0, 0, 1, 1], [], []>} : vector<2x16xf32>, vector<16x32xf32>, vector<2x32xf32> -> vector<2x32xf32>
    %19 = arith.addf %18, %9 : vector<2x32xf32>
    %c0_12 = arith.constant 0 : index
    %c0_13 = arith.constant 0 : index
    %20 = vector.load %arg7[%c0_12, %c0_13] : memref<1x32xf32, #tpu.memory_space<vmem>>, vector<1x32xf32>
    %21 = vector.broadcast %20 : vector<1x32xf32> to vector<2x32xf32>
    %22 = arith.addf %19, %21 : vector<2x32xf32>
    %cst_14 = arith.constant 0.000000e+00 : f32
    %23 = vector.broadcast %cst_14 : f32 to vector<2x32xf32>
    %24 = arith.maximumf %22, %23 : vector<2x32xf32>
    %c0_15 = arith.constant 0 : index
    %c0_16 = arith.constant 0 : index
    %25 = vector.load %arg8[%c0_15, %c0_16] : memref<32x128xf32, #tpu.memory_space<vmem>>, vector<32x128xf32>
    %cst_17 = arith.constant dense<0.000000e+00> : vector<2x128xf32>
    %26 = tpu.matmul %24, %25, %cst_17 {dimension_numbers = #tpu.dot_dimension_numbers<[1], [0], [0], [1], [0, 0, 1, 1], [], []>} : vector<2x32xf32>, vector<32x128xf32>, vector<2x128xf32> -> vector<2x128xf32>
    %c0_18 = arith.constant 0 : index
    %c0_19 = arith.constant 0 : index
    %27 = vector.load %arg9[%c0_18, %c0_19] : memref<1x128xf32, #tpu.memory_space<vmem>>, vector<1x128xf32>
    %28 = vector.broadcast %27 : vector<1x128xf32> to vector<2x128xf32>
    %29 = arith.addf %26, %28 : vector<2x128xf32>
    %c0_20 = arith.constant 0 : index
    %c0_21 = arith.constant 0 : index
    %30 = vector.load %arg10[%c0_20, %c0_21] : memref<2x128xf32, #tpu.memory_space<vmem>>, vector<2x128xf32>
    tpu.vector_store %arg10[%c0_20, %c0_21], %29 {strides = array<i32>} : memref<2x128xf32, #tpu.memory_space<vmem>>, vector<2x128xf32>,
    return
  }
  func.func @transform_0(%arg0: i32) -> (i32, i32, i32) {
    %c0_i32 = arith.constant 0 : i32
    %c0_i32_0 = arith.constant 0 : i32
    %c0_i32_1 = arith.constant 0 : i32
    return %c0_i32, %arg0, %c0_i32_0 : i32, i32, i32
  }
  func.func @transform_1(%arg0: i32) -> i32 {
    %c0_i32 = arith.constant 0 : i32
    %c0_i32_0 = arith.constant 0 : i32
    return %c0_i32 : i32
  }
  func.func @transform_2(%arg0: i32) -> i32 {
    %c0_i32 = arith.constant 0 : i32
    %c0_i32_0 = arith.constant 0 : i32
    return %c0_i32 : i32
  }
  func.func @transform_3(%arg0: i32) -> (i32, i32) {
    %c0_i32 = arith.constant 0 : i32
    %c0_i32_0 = arith.constant 0 : i32
    %c0_i32_1 = arith.constant 0 : i32
    return %c0_i32, %c0_i32_0 : i32, i32
  }
  func.func @transform_4(%arg0: i32) -> (i32, i32) {
    %c0_i32 = arith.constant 0 : i32
    %c0_i32_0 = arith.constant 0 : i32
    %c0_i32_1 = arith.constant 0 : i32
    return %c0_i32, %c0_i32_0 : i32, i32
  }
  func.func @transform_5(%arg0: i32) -> (i32, i32) {
    %c0_i32 = arith.constant 0 : i32
    %c0_i32_0 = arith.constant 0 : i32
    %c0_i32_1 = arith.constant 0 : i32
    return %c0_i32, %c0_i32_0 : i32, i32
  }
  func.func @transform_6(%arg0: i32) -> (i32, i32) {
    %c0_i32 = arith.constant 0 : i32
    %c0_i32_0 = arith.constant 0 : i32
    %c0_i32_1 = arith.constant 0 : i32
    return %c0_i32, %c0_i32_0 : i32, i32
  }
  func.func @transform_7(%arg0: i32) -> (i32, i32) {
    %c0_i32 = arith.constant 0 : i32
    %c0_i32_0 = arith.constant 0 : i32
    %c0_i32_1 = arith.constant 0 : i32
    return %c0_i32, %c0_i32_0 : i32, i32
  }
  func.func @transform_8(%arg0: i32) -> (i32, i32) {
    %c0_i32 = arith.constant 0 : i32
    %c0_i32_0 = arith.constant 0 : i32
    %c0_i32_1 = arith.constant 0 : i32
    return %c0_i32, %c0_i32_0 : i32, i32
  }
  func.func @transform_9(%arg0: i32) -> (i32, i32) {
    %c0_i32 = arith.constant 0 : i32
    %c0_i32_0 = arith.constant 0 : i32
    return %arg0, %c0_i32 : i32, i32
  }
}

</mosaic_0001>

<bundles_post_ra>
// kernel: tpu_custom_call.1
= control target key start
LH: loop header
LB: loop body
LE: loop exit
PB: predicated region body
PF: predicated region fallthrough
CT: control target
= control target key end

     0   :  { %16 = vsyncpa [#allocation5], 0  ;;  %s584_s0 = inlined_call_operand.vmem [shape: f32[1,2,8], index: 0, kind: input, shape index: {}]   ;;  %s585_s1 = inlined_call_operand.<no memory space> [shape: f32[1], index: 1, kind: input, shape index: {}]   ;;  %s586_s2 = inlined_call_operand.<no memory space> [shape: f32[1], index: 2, kind: input, shape index: {}]   ;;  %s587_s3 = inlined_call_operand.hbm [shape: f32[8,16], index: 3, kind: input, shape index: {}]   ;;  %s588_s4 = inlined_call_operand.hbm [shape: f32[16,32], index: 4, kind: input, shape index: {}]   ;;  %s589_s5 = inlined_call_operand.vmem [shape: f32[1,32], index: 5, kind: input, shape index: {}]   ;;  %s590_s6 = inlined_call_operand.vmem [shape: f32[1,32], index: 6, kind: input, shape index: {}]   ;;  %s591_s7 = inlined_call_operand.hbm [shape: f32[32,128], index: 7, kind: input, shape index: {}]   ;;  %s592_s8 = inlined_call_operand.vmem [shape: f32[1,128], index: 8, kind: input, shape index: {}]   ;;  %s593_s9 = inlined_call_operand.hbm [shape: f32[2,128], index: 9, kind: output, shape index: {}]  }
   0x1   :  { %17 = vsyncpa [#allocation8], 0 }
   0x2   :  { %18 = vsyncpa [#allocation6], 0  ;;  %s492_s30 = smov [#allocation7]  }
   0x3   :  { %s40_s10 = sshll.u32 %s492_s30, 4  ;;  %s41_s10 = int_to_ptr.vmem [resolvable:$true] %s40_s10 }
   0x4   :  { %s414_s11 = scalar_lea.vmem %s41_s10, 256  ;;  %p419_p1 = scmp.lt.s32.totalorder %s41_s10, %s41_s10 }
   0x5   :  { %p415_p0 = scmp.ne.s32.totalorder %s41_s10, %s414_s11  ;;  %p420_p2 = scmp.lt.s32.totalorder %s414_s11, %s414_s11 }
   0x7   :  { %p421_p3 = por %p420_p2, %p419_p1 }
   0x9   :  { %p422_p4 = pnand %p421_p3, %p415_p0 }
   0xb   :  { %425 = shalt.err (!%p422_p4)
}
   0xc   :  { %s493_s12 = smov 128   ;;  %s494_s13 = smov 8  }
   0xd   :  { %46 = dma.hbm_to_vmem [thread:$0]  %s588_s4, 256, %s41_s10, [#allocation8], %s493_s12, %s493_s12, %s494_s13  }
   0xe   :  { %s495_s16 = smov [#allocation4]   ;;  %s496_s18 = smov [#allocation9]  }
   0xf   :  { %s31_s17 = sshll.u32 %s495_s16, 4  ;;  %s56_s19 = sshll.u32 %s496_s18, 4  ;;  %s32_s17 = int_to_ptr.vmem [resolvable:$true] %s31_s17  ;;  %s57_s19 = int_to_ptr.vmem [resolvable:$true] %s56_s19 }
  0x10   :  { %s434_s20 = scalar_lea.vmem %s32_s17, 128  ;;  %p439_p6 = scmp.lt.s32.totalorder %s32_s17, %s32_s17 }
  0x11   :  { %p435_p5 = scmp.ne.s32.totalorder %s32_s17, %s434_s20  ;;  %p440_p7 = scmp.lt.s32.totalorder %s434_s20, %s434_s20 }
  0x13   :  { %p441_p8 = por %p440_p7, %p439_p6 }
  0x15   :  { %p442_p9 = pnand %p441_p8, %p435_p5 }
  0x17   :  { %445 = shalt.err (!%p442_p9)
}
  0x18   :  { %34 = dma.hbm_to_vmem [thread:$0]  %s587_s3, 128, %s32_s17, [#allocation5]  }
  0x19   :  { %s454_s23 = scalar_lea.vmem %s57_s19, 512  ;;  %p459_p11 = scmp.lt.s32.totalorder %s57_s19, %s57_s19 }
  0x1a   :  { %p455_p10 = scmp.ne.s32.totalorder %s57_s19, %s454_s23  ;;  %p460_p12 = scmp.lt.s32.totalorder %s454_s23, %s454_s23 }
  0x1c   :  { %p461_p13 = por %p460_p12, %p459_p11 }
  0x1e   :  { %p462_p0 = pnand %p461_p13, %p455_p10 }
  0x20   :  { %465 = shalt.err (!%p462_p0)
}
  0x21   :  { %62 = dma.hbm_to_vmem [thread:$0]  %s591_s7, 512, %s57_s19, [#allocation8], %s493_s12, %s493_s12, %s494_s13  }
  0x22   :  { %486 = dma.done.wait [#allocation5], 128  }
  0x23   :  { %487 = vsyncadd [#allocation5], 4294967168 }
  0x24   :  { %488 = dma.done.wait [#allocation8], 768  }
  0x25   :  { %489 = vsyncadd [#allocation8], 4294966528  ;;  %v497_v0 = vmov 0.0   ;;  %vm498_vm0 = vmmov 0   ;;  %v77_v1 = vstv %s585_s1  ;;  %v95_v2 = vld [vmem:[#allocation4] sm:$0xff]  ;;  %v92_v4 = vstv %s586_s2  ;;  %v171_v8 = vld [vmem:[#allocation7 + $0x8] sm:$0xff] }
  0x26   :  { %373 = vmatprep.subr.mxu1 %v497_v0  ;;  %375 = vmatprep.mubr.msk.f32.mxu1 %vm498_vm0, %v497_v0  ;;  %v75_v3 = vld [vmem:[%s584_s0] sm:$0x3]  ;;  %vm96_vm1 = vcmask 64512   ;;  %v170_v9 = vld [vmem:[#allocation7] sm:$0xff]  ;;  %v499_v10 = vmov 7   ;;  %vm172_vm2 = vcmask 130048  }
  0x27   :  { %385 = vmatprep.subr.mxu0 %v497_v0  ;;  %393 = vmatprep.mubr.msk.f32.mxu0 %vm498_vm0, %v497_v0  ;;  %v78_v5 = vmul.f32 %v77_v1, %v75_v3  ;;  %v258_v13 = vld [vmem:[#allocation9 + $0x18] sm:$0xff]  ;;  %v257_v14 = vld [vmem:[#allocation9 + $0x10] sm:$0xff]  ;;  %v256_v15 = vld [vmem:[#allocation9 + $0x8] sm:$0xff]  ;;  %vm266_vm3 = vcmask 261120   ;;  %s500_s11 = smov [#allocation10]  }
  0x28   :  { %374 = vmatpush3.msra.mxu1 %v95_v2  ;;  %405 = vset.pattern.permute.xlu0 %v499_v10  ;;  %v255_v16 = vld [vmem:[#allocation9] sm:$0xff]  ;;  %v357_v18 = vld [vmem:[%s589_s5] ss:$0 sm:$0xff]  ;;  %s347_s12 = sshll.u32 %s500_s11, 4  ;;  %s348_s12 = int_to_ptr.vmem [resolvable:$true] %s347_s12 }
  0x29   :  { %378 = vmatprep.subr.mxu1 %v497_v0  ;;  %v93_v6 = vadd.f32 %v92_v4, %v78_v5  ;;  %81 = vperm.xlu0 %405, %v75_v3   ;;  %v360_v21 = vld [vmem:[%s590_s6] ss:$0 sm:$0xff]  ;;  %s466_s5 = scalar_lea.vmem %s348_s12, 32  ;;  %p471_p2 = scmp.lt.s32.totalorder %s348_s12, %s348_s12 }
  0x2a   :  { %386 = vmatpush3.msra.mxu0 %v258_v13  ;;  %v361_v26 = vld [vmem:[%s592_s8] ss:$0 sm:$0xff]  ;;  %p467_p1 = scmp.ne.s32.totalorder %s348_s12, %s466_s5  ;;  %p472_p3 = scmp.lt.s32.totalorder %s466_s5, %s466_s5 }
  0x2b   :  { %v94_v7 = vmax.f32 %v93_v6, 0.0  ;;  %387 = vmatprep.subr.mxu0 %v497_v0 }
  0x2c   :  { %388 = vmatpush3.msra.mxu0 %v257_v14  ;;  %p473_p4 = por %p472_p3, %p471_p2 }
  0x2d   :  { %376 = vmatmul.mubr.msk.f32.vlgmr.msra.gmra.mxu1 %vm96_vm1, %v94_v7  ;;  %389 = vmatprep.subr.mxu0 %v497_v0 }
  0x2e   :  { %379 = vmatpush3.msra.mxu1 %v171_v8  ;;  %382 = vmatprep.mubr.msk.f32.mxu1 %vm498_vm0, %v497_v0  ;;  %p474_p5 = pnand %p473_p4, %p467_p1 }
  0x2f   :  { %380 = vmatprep.subr.mxu1 %v497_v0  ;;  %390 = vmatpush3.msra.mxu0 %v256_v15 }
  0x30   :  { %381 = vmatpush3.msra.mxu1 %v170_v9  ;;  %391 = vmatprep.subr.mxu0 %v497_v0 }
  0x31   :  { %392 = vmatpush3.msra.mxu0 %v255_v16 }
  0xa4   :  { %v82_v17 = vpop.permute.xlu0 %81 }
  0xa5   :  { %v90_v19 = vmul.f32 %v357_v18, %v82_v17 }
  0xed   :  { %v166_v11 = vpop.f32.mrf.mxu1 }
  0xee   :  { %383 = vmatmul.mubr.msk.f32.vlgmr.msra.gmra.mxu1 %vm172_vm2, %v166_v11 }
  0xef   :  { %v377_v12 = vpop.f32.mrf.mxu1 }
 0x1ae   :  { %v242_v20 = vpop.f32.mrf.mxu1 }
 0x1af   :  { %v243_v22 = vadd.f32 %v242_v20, %v90_v19 }
 0x1b0   :  { %v384_v23 = vpop.f32.mrf.mxu1 }
 0x1b1   :  { %v253_v24 = vadd.f32 %v360_v21, %v243_v22 }
 0x1b3   :  { %v254_v25 = vmax.f32 %v253_v24, 0.0 }
 0x1b5   :  { %394 = vmatmul.mubr.msk.f32.vlgmr.msra.gmra.mxu0 %vm266_vm3, %v254_v25 }
 0x275   :  { %v336_v27 = vpop.f32.mrf.mxu0 }
 0x276   :  { %v337_v28 = vadd.f32 %v361_v26, %v336_v27 }
 0x277   :  { %v395_v29 = vpop.f32.mrf.mxu0 }
 0x278   :  { %340 = vst [vmem:[#allocation10] sm:$0x3] %v337_v28 }
 0x279   :  { %477 = shalt.err (!%p474_p5)
}
 0x27a   :  { %350 = dma.vmem_to_hbm [thread:$0]  %s348_s12, 32, %s593_s9, [#allocation6]  }
 0x27b   :  { %490 = dma.done.wait [#allocation6], 32  }
 0x27c   :  { %491 = vsyncadd [#allocation6], 4294967264 }
 0x27d   :  { %354 = vsyncpa [#allocation5], 1 }
 0x27e   :  { %355 = vsyncpa [#allocation8], 1 }
 0x27f   :  { %356 = vsyncpa [#allocation6], 1 }

</bundles_post_ra>
